<compile_context>
chip_gen: v5e
topology: v5e:2x2
jax: 0.10.0
libtpu: 0.0.40
codegen_flags: <defaults>
</compile_context>

<pallas_src>
import functools

import jax
import jax.numpy as jnp
from jax.experimental import pallas as pl
from jax.experimental.pallas import tpu as pltpu


def _round_up(a, m):
    return (a + m - 1) // m * m


def _build_aux(H, W, r, HWp):
    """Aux block (rows are f32, length HWp):
         row 0            : inv_cnt = 1/(ch*cw) on valid lanes, 0 on pad lanes
         rows 4(d-1)+1..4 : validity masks for the +d / -d vertical and horizontal taps.
    """
    HW = H * W
    idx = jnp.arange(HWp, dtype=jnp.int32)
    valid = idx < HW
    row = jnp.where(valid, idx // W, 0)
    col = jnp.where(valid, idx % W, 0)
    ch = jnp.minimum(row + r, H - 1) - jnp.maximum(row - r, 0) + 1
    cw = jnp.minimum(col + r, W - 1) - jnp.maximum(col - r, 0) + 1
    inv_cnt = jnp.where(valid, 1.0 / (ch * cw).astype(jnp.float32), 0.0)

    one, zero = jnp.float32(1.0), jnp.float32(0.0)
    rows = [inv_cnt]
    for d in range(1, r + 1):
        rows.append(jnp.where(valid & (row >= d), one, zero))           # x[i-d, j] valid
        rows.append(jnp.where(valid & (row <= H - 1 - d), one, zero))   # x[i+d, j] valid
        rows.append(jnp.where(valid & (col >= d), one, zero))           # v[i, j-d] valid
        rows.append(jnp.where(valid & (col <= W - 1 - d), one, zero))   # v[i, j+d] valid
    ar = _round_up(len(rows), 8)
    rows += [jnp.zeros((HWp,), jnp.float32)] * (ar - len(rows))
    return jnp.stack(rows, axis=0)


def _pooling_kernel(H, W, pool_size, aux_ref, x_ref, o_ref):
    """aux_ref: (AR, HWp) resident masks/inv-count.  x_ref/o_ref: (TR, HWp), each row is
    one independent flattened channel image (possibly lane-padded past H*W with zeros)."""
    r = pool_size // 2
    HWp = x_ref.shape[1]

    xv = x_ref[...].astype(jnp.float32)          # f32 accumulation, cast only at store

    # ---- vertical (2r+1)-tap sum: lane rotations by multiples of W, masked at top/bottom.
    vsum = xv
    for d in range(1, r + 1):
        a = 4 * (d - 1)
        up = pltpu.roll(xv, d * W, 1) * aux_ref[1 + a:2 + a, :]          # x[i-d, j]
        dn = pltpu.roll(xv, HWp - d * W, 1) * aux_ref[2 + a:3 + a, :]    # x[i+d, j]
        vsum = vsum + up + dn

    # ---- horizontal sum: lane rotations by +-d, masked at image-row edges (and pad lanes).
    hsum = vsum
    for d in range(1, r + 1):
        a = 4 * (d - 1)
        lf = pltpu.roll(vsum, d, 1) * aux_ref[3 + a:4 + a, :]            # v[i, j-d]
        rt = pltpu.roll(vsum, HWp - d, 1) * aux_ref[4 + a:5 + a, :]      # v[i, j+d]
        hsum = hsum + lf + rt

    # count_include_pad=False divisor is precomputed as 1/(ch*cw) in aux row 0.
    o_ref[...] = (hsum * aux_ref[0:1, :] - xv).astype(o_ref.dtype)


def pooling(x_nchw, pool_size=3, *, block_rows=None, target_block_bytes=1 << 20):
    """PoolFormer `Pooling.forward`: avg_pool(x) - x.  x: (B, C, H, W) NCHW like PyTorch."""
    assert pool_size % 2 == 1, "only odd pool sizes (PyTorch / PoolFormer default is 3)"
    B, C, H, W = x_nchw.shape
    r = pool_size // 2
    assert r < H and r < W, "pool radius must be smaller than both spatial dims"

    HW = H * W
    HWp = _round_up(HW, 128)                    # lane-dense, unmasked stores
    R = B * C
    itemsize = max(jnp.dtype(x_nchw.dtype).itemsize, 4)   # in-kernel f32 temporaries

    if block_rows is None:
        tr_bytes = max(8, (target_block_bytes // (HWp * itemsize)) // 8 * 8)
        tr_steps = max(8, _round_up(pl.cdiv(R, 8), 8))     # aim for >= ~8 pipeline steps
        tr = min(tr_bytes, tr_steps, _round_up(R, 8))
    else:
        tr = _round_up(block_rows, 8)
    Rp = _round_up(R, tr)
    grid = (Rp // tr,)

    xf = x_nchw.reshape(R, HW)
    if Rp != R or HWp != HW:
        xf = jnp.pad(xf, ((0, Rp - R), (0, HWp - HW)))

    aux = _build_aux(H, W, r, HWp)
    ar = aux.shape[0]

    out = pl.pallas_call(
        functools.partial(_pooling_kernel, H, W, pool_size),
        out_shape=jax.ShapeDtypeStruct((Rp, HWp), x_nchw.dtype),
        grid=grid,
        in_specs=[
            pl.BlockSpec((ar, HWp), lambda i: (0, 0)),     # aux: resident, DMA'd once
            pl.BlockSpec((tr, HWp), lambda i: (i, 0)),
        ],
        out_specs=pl.BlockSpec((tr, HWp), lambda i: (i, 0)),
        input_output_aliases={1: 0},                       # output reuses x's HBM buffer
        compiler_params=pltpu.CompilerParams(
            dimension_semantics=("parallel",),
            vmem_limit_bytes=32 * 1024 * 1024,
        ),
    )(aux, xf)
    return out[:R, :HW].reshape(B, C, H, W)


def _pooling_ref(x, pool_size=3):
    """Pure-JAX reference: nn.AvgPool2d(k, 1, k//2, count_include_pad=False)(x) - x."""
    r = pool_size // 2
    B, C, H, W = x.shape
    xp = jnp.pad(x, ((0, 0), (0, 0), (r, r), (r, r)))
    s = 0.0
    for i in range(pool_size):
        for j in range(pool_size):
            s = s + xp[:, :, i:i + H, j:j + W]
    rh = jnp.arange(H)
    rw = jnp.arange(W)
    ch = jnp.minimum(rh + r, H - 1) - jnp.maximum(rh - r, 0) + 1
    cw = jnp.minimum(rw + r, W - 1) - jnp.maximum(rw - r, 0) + 1
    cnt = (ch[:, None] * cw[None, :]).astype(x.dtype)
    return s / cnt - x


if __name__ == "__main__":
    key = jax.random.PRNGKey(0)

    # Lane-aligned case (H*W = 256).
    x = jax.random.normal(key, (2, 4, 16, 16), jnp.float32)
    out = jax.block_until_ready(pooling(x))
    assert out.shape == x.shape, out.shape
    assert bool(jnp.all(jnp.isfinite(out)))
    ref = _pooling_ref(x)
    assert bool(jnp.allclose(out, ref, rtol=1e-5, atol=1e-5)), \
        float(jnp.max(jnp.abs(out - ref)))

    # Unaligned PoolFormer-like case (H*W = 49 -> lane-padded to 128).
    x2 = jax.random.normal(jax.random.PRNGKey(1), (2, 4, 7, 7), jnp.float32)
    out2 = jax.block_until_ready(pooling(x2))
    ref2 = _pooling_ref(x2)
    assert bool(jnp.allclose(out2, ref2, rtol=1e-5, atol=1e-5)), \
        float(jnp.max(jnp.abs(out2 - ref2)))

    print("KERNEL_OK")
</pallas_src>

<mosaic_0001>
module attributes {stable_mosaic.version = 11 : i64} {
  func.func @_pooling_kernel(%arg0: i32, %arg1: memref<8x256xf32, #tpu.memory_space<vmem>>, %arg2: memref<8x256xf32, #tpu.memory_space<vmem>>, %arg3: memref<8x256xf32, #tpu.memory_space<vmem>>) attributes {dimension_semantics = [#tpu.dimension_semantics<parallel>], iteration_bounds = array<i64: 1>, scalar_prefetch = 0 : i64, scratch_operands = 0 : i64, tpu.core_type = #tpu.core_type<tc>, window_params = [{pipeline_mode = #tpu.pipeline_mode<synchronous>, transform_indices = @transform_0, window_bounds = array<i64: 8, 256>}, {transform_indices = @transform_1, window_bounds = array<i64: 8, 256>}, {transform_indices = @transform_2, window_bounds = array<i64: 8, 256>}]} {
    %c0 = arith.constant 0 : index
    %c0_0 = arith.constant 0 : index
    %0 = vector.load %arg2[%c0, %c0_0] : memref<8x256xf32, #tpu.memory_space<vmem>>, vector<8x256xf32>
    %c16_i32 = arith.constant 16 : i32
    %1 = tpu.dynamic_rotate %0 by %c16_i32 dim 1 : vector<8x256xf32>, i32 -> vector<8x256xf32>
    %c1 = arith.constant 1 : index
    %c0_1 = arith.constant 0 : index
    %2 = vector.load %arg1[%c1, %c0_1] : memref<8x256xf32, #tpu.memory_space<vmem>>, vector<1x256xf32>
    %3 = vector.broadcast %2 : vector<1x256xf32> to vector<8x256xf32>
    %4 = arith.mulf %1, %3 : vector<8x256xf32>
    %c240_i32 = arith.constant 240 : i32
    %5 = tpu.dynamic_rotate %0 by %c240_i32 dim 1 : vector<8x256xf32>, i32 -> vector<8x256xf32>
    %c2 = arith.constant 2 : index
    %c0_2 = arith.constant 0 : index
    %6 = vector.load %arg1[%c2, %c0_2] : memref<8x256xf32, #tpu.memory_space<vmem>>, vector<1x256xf32>
    %7 = vector.broadcast %6 : vector<1x256xf32> to vector<8x256xf32>
    %8 = arith.mulf %5, %7 : vector<8x256xf32>
    %9 = arith.addf %0, %4 : vector<8x256xf32>
    %10 = arith.addf %9, %8 : vector<8x256xf32>
    %c1_i32 = arith.constant 1 : i32
    %11 = tpu.dynamic_rotate %10 by %c1_i32 dim 1 : vector<8x256xf32>, i32 -> vector<8x256xf32>
    %c3 = arith.constant 3 : index
    %c0_3 = arith.constant 0 : index
    %12 = vector.load %arg1[%c3, %c0_3] : memref<8x256xf32, #tpu.memory_space<vmem>>, vector<1x256xf32>
    %13 = vector.broadcast %12 : vector<1x256xf32> to vector<8x256xf32>
    %14 = arith.mulf %11, %13 : vector<8x256xf32>
    %c255_i32 = arith.constant 255 : i32
    %15 = tpu.dynamic_rotate %10 by %c255_i32 dim 1 : vector<8x256xf32>, i32 -> vector<8x256xf32>
    %c4 = arith.constant 4 : index
    %c0_4 = arith.constant 0 : index
    %16 = vector.load %arg1[%c4, %c0_4] : memref<8x256xf32, #tpu.memory_space<vmem>>, vector<1x256xf32>
    %17 = vector.broadcast %16 : vector<1x256xf32> to vector<8x256xf32>
    %18 = arith.mulf %15, %17 : vector<8x256xf32>
    %19 = arith.addf %10, %14 : vector<8x256xf32>
    %20 = arith.addf %19, %18 : vector<8x256xf32>
    %c0_5 = arith.constant 0 : index
    %c0_6 = arith.constant 0 : index
    %21 = vector.load %arg1[%c0_5, %c0_6] : memref<8x256xf32, #tpu.memory_space<vmem>>, vector<1x256xf32>
    %22 = vector.broadcast %21 : vector<1x256xf32> to vector<8x256xf32>
    %23 = arith.mulf %20, %22 : vector<8x256xf32>
    %24 = arith.subf %23, %0 : vector<8x256xf32>
    %c0_7 = arith.constant 0 : index
    %c0_8 = arith.constant 0 : index
    %25 = vector.load %arg3[%c0_7, %c0_8] : memref<8x256xf32, #tpu.memory_space<vmem>>, vector<8x256xf32>
    tpu.vector_store %arg3[%c0_7, %c0_8], %24 {strides = array<i32>} : memref<8x256xf32, #tpu.memory_space<vmem>>, vector<8x256xf32>,
    return
  }
  func.func @transform_0(%arg0: i32) -> (i32, i32) {
    %c0_i32 = arith.constant 0 : i32
    %c0_i32_0 = arith.constant 0 : i32
    %c0_i32_1 = arith.constant 0 : i32
    return %c0_i32, %c0_i32_0 : i32, i32
  }
  func.func @transform_1(%arg0: i32) -> (i32, i32) {
    %c0_i32 = arith.constant 0 : i32
    %c0_i32_0 = arith.constant 0 : i32
    return %arg0, %c0_i32 : i32, i32
  }
  func.func @transform_2(%arg0: i32) -> (i32, i32) {
    %c0_i32 = arith.constant 0 : i32
    %c0_i32_0 = arith.constant 0 : i32
    return %arg0, %c0_i32 : i32, i32
  }
}

</mosaic_0001>

<bundles_post_ra>
// kernel: tpu_custom_call.1
= control target key start
LH: loop header
LB: loop body
LE: loop exit
PB: predicated region body
PF: predicated region fallthrough
CT: control target
= control target key end

     0   :  { %7 = vsyncpa [#allocation3], 0  ;;  %s247_s0 = inlined_call_operand.vmem [shape: f32[8,256], index: 0, kind: input, shape index: {}]   ;;  %s248_s1 = inlined_call_operand.hbm [shape: f32[8,256], index: 1, kind: input, shape index: {}, may-alias: {1,2}]   ;;  %s249_s2 = inlined_call_operand.hbm [shape: f32[8,256], index: 2, kind: output, shape index: {}, may-alias: {1,2}]  }
   0x1   :  { %8 = vsyncpa [#allocation4], 0  ;;  %s16_s11 = sshll.u32 %s248_s1, 4  ;;  %s193_s12 = smov [#allocation2]   ;;  %s17_s11 = int_to_ptr.hbm [resolvable:$true] %s16_s11 }
   0x2   :  { %s18_s13 = sshll.u32 %s193_s12, 4  ;;  %s19_s13 = int_to_ptr.vmem [resolvable:$true] %s18_s13 }
   0x3   :  { %21 = dma.hbm_to_vmem [thread:$0]  %s17_s11, 256, %s19_s13, [#allocation3]  }
   0x4   :  { %189 = dma.done.wait [#allocation3], 256  }
   0x5   :  { %190 = vsyncadd [#allocation3], 4294967040  ;;  %v217_v0 = vld [vmem:[#allocation2] sm:$0xff]  ;;  %s194_s14 = smov 112   ;;  %s195_s15 = smov 16   ;;  %v221_v1 = vld [vmem:[#allocation2 + $0x8] sm:$0xff]  ;;  %v32_v2 = vlaneseq }
   0x6   :  { %46 = vrot.lane.b32.xlu1 %v217_v0, %s194_s14  ;;  %28 = vrot.lane.b32.xlu0 %v217_v0, %s195_s15  ;;  %v131_v6 = vld [vmem:[%s247_s0 + $0x1] ss:$8 sm:$0x3]  ;;  %v132_v7 = vld [vmem:[%s247_s0 + $0x2] ss:$8 sm:$0x3] }
   0x7   :  { %v33_v5 = vand.u32 127, %v32_v2  ;;  %v40_v8 = vperm.slane %v131_v6, 0  ;;  %v41_v9 = vperm.slane %v131_v6, 1  ;;  %v56_v10 = vperm.slane %v132_v7, 0  ;;  %s196_s19 = smov 127   ;;  %s197_s20 = smov 1  }
   0x8   :  { %v57_v11 = vperm.slane %v132_v7, 1  ;;  %v133_v27 = vld [vmem:[%s247_s0 + $0x3] ss:$8 sm:$0x3]  ;;  %s198_s27 = smov [#allocation5]  }
   0x9   :  { %vm50_vm0 = vcmp.lt.s32.totalorder %v33_v5, 112  ;;  %vm34_vm1 = vcmp.lt.s32.totalorder %v33_v5, 16  ;;  %vm70_vm2 = vcmp.lt.s32.totalorder %v33_v5, 1  ;;  %v76_v29 = vperm.slane %v133_v27, 0  ;;  %s119_s28 = sshll.u32 %s198_s27, 4  ;;  %s120_s28 = int_to_ptr.vmem [resolvable:$true] %s119_s28 }
   0xa   :  { %v77_v30 = vperm.slane %v133_v27, 1  ;;  %v134_v33 = vld [vmem:[%s247_s0 + $0x4] ss:$8 sm:$0x3]  ;;  %vm86_vm3 = vcmp.lt.s32.totalorder %v33_v5, 127 }
   0xb   :  { %v92_v36 = vperm.slane %v134_v33, 0  ;;  %v93_v37 = vperm.slane %v134_v33, 1  ;;  %v102_v38 = vld [vmem:[%s247_s0] ss:$8 sm:$0x3]  ;;  %s121_s0 = sshll.u32 %s249_s2, 4  ;;  %s122_s0 = int_to_ptr.hbm [resolvable:$true] %s121_s0 }
   0xc   :  { %v104_v41 = vperm.slane %v102_v38, 0  ;;  %v105_v42 = vperm.slane %v102_v38, 1 }
   0xe   :  { %48 = vrot.lane.b32.xlu1 %v221_v1, %s194_s14  ;;  %30 = vrot.lane.b32.xlu0 %v221_v1, %s195_s15 }
  0x78   :  { %v47_v3 = vpop.permute.xlu1 %46  ;;  %v29_v4 = vpop.permute.xlu0 %28 }
  0x80   :  { %v49_v12 = vpop.permute.xlu1 %48  ;;  %v31_v13 = vpop.permute.xlu0 %30 }
  0x81   :  { %v51_v14 = vsel %vm50_vm0, %v47_v3, %v49_v12  ;;  %v52_v15 = vsel %vm50_vm0, %v49_v12, %v47_v3  ;;  %v35_v16 = vsel %vm34_vm1, %v29_v4, %v31_v13  ;;  %v36_v17 = vsel %vm34_vm1, %v31_v13, %v29_v4 }
  0x82   :  { %v44_v18 = vmul.f32 %v40_v8, %v36_v17  ;;  %v45_v19 = vmul.f32 %v41_v9, %v35_v16  ;;  %v60_v20 = vmul.f32 %v56_v10, %v51_v14  ;;  %v61_v21 = vmul.f32 %v57_v11, %v52_v15 }
  0x84   :  { %v62_v22 = vadd.f32 %v44_v18, %v217_v0  ;;  %v63_v23 = vadd.f32 %v45_v19, %v221_v1 }
  0x86   :  { %v64_v24 = vadd.f32 %v62_v22, %v60_v20  ;;  %v65_v25 = vadd.f32 %v63_v23, %v61_v21 }
  0x88   :  { %82 = vrot.lane.b32.xlu0 %v64_v24, %s196_s19  ;;  %66 = vrot.lane.b32.xlu2 %v64_v24, %s197_s20 }
  0x89   :  { %84 = vrot.lane.b32.xlu1 %v65_v25, %s196_s19 }
  0x90   :  { %68 = vrot.lane.b32.xlu2 %v65_v25, %s197_s20 }
  0xe2   :  { %v67_v26 = vpop.permute.xlu2 %66 }
  0xea   :  { %v69_v28 = vpop.permute.xlu2 %68 }
  0xeb   :  { %v71_v31 = vsel %vm70_vm2, %v67_v26, %v69_v28  ;;  %v72_v32 = vsel %vm70_vm2, %v69_v28, %v67_v26 }
  0xec   :  { %v80_v34 = vmul.f32 %v76_v29, %v72_v32  ;;  %v81_v35 = vmul.f32 %v77_v30, %v71_v31 }
  0xee   :  { %v98_v45 = vadd.f32 %v80_v34, %v64_v24  ;;  %v99_v46 = vadd.f32 %v81_v35, %v65_v25 }
  0xfa   :  { %v83_v39 = vpop.permute.xlu0 %82 }
  0xfb   :  { %v85_v40 = vpop.permute.xlu1 %84 }
  0xfc   :  { %v87_v43 = vsel %vm86_vm3, %v83_v39, %v85_v40  ;;  %v88_v44 = vsel %vm86_vm3, %v85_v40, %v83_v39 }
  0xfd   :  { %v96_v47 = vmul.f32 %v92_v36, %v87_v43  ;;  %v97_v48 = vmul.f32 %v93_v37, %v88_v44 }
  0xff   :  { %v100_v49 = vadd.f32 %v98_v45, %v96_v47  ;;  %v101_v50 = vadd.f32 %v99_v46, %v97_v48 }
 0x101   :  { %v108_v51 = vmul.f32 %v104_v41, %v100_v49  ;;  %v109_v52 = vmul.f32 %v105_v42, %v101_v50 }
 0x103   :  { %v110_v53 = vsub.f32 %v108_v51, %v217_v0  ;;  %v111_v54 = vsub.f32 %v109_v52, %v221_v1 }
 0x105   :  { %112 = vst [vmem:[#allocation5] sm:$0xff] %v110_v53 }
 0x106   :  { %113 = vst [vmem:[#allocation5 + $0x8] sm:$0xff] %v111_v54 }
 0x107   :  { %124 = dma.vmem_to_hbm [thread:$0]  %s120_s28, 256, %s122_s0, [#allocation4]  }
 0x108   :  { %191 = dma.done.wait [#allocation4], 256  }
 0x109   :  { %192 = vsyncadd [#allocation4], 4294967040 }
 0x10a   :  { %129 = vsyncpa [#allocation3], 1 }
 0x10b   :  { %130 = vsyncpa [#allocation4], 1 }

</bundles_post_ra>
